<compile_context>
chip_gen: v5e
topology: v5e:2x2
jax: 0.10.0
libtpu: 0.0.40
codegen_flags: <defaults>
</compile_context>

<pallas_src>
import functools

import jax
import jax.numpy as jnp
from jax.experimental import pallas as pl
from jax.experimental.pallas import tpu as pltpu

_LANE = 128


def _log_stablemax_kernel(x_ref, o_ref, *, clamp_min: float, d_valid: int):
    # Load the (tile_rows, D_pad) block; do math in f32 for stability.
    x = x_ref[...].astype(jnp.float32)
    # logits = clamp(logits, min=clamp_min)
    x = jnp.maximum(x, jnp.float32(clamp_min))
    # s(x) = x + 1 if x >= 0 else 1 / (1 - x)
    s = jnp.where(x >= 0.0, x + 1.0, pl.reciprocal(1.0 - x, approx=False))
    # Exclude padded lanes from the row sum (they were padded with zeros and
    # would otherwise contribute s(0) = 1 each).
    if d_valid != x.shape[-1]:
        lane = jax.lax.broadcasted_iota(jnp.int32, x.shape, x.ndim - 1)
        s = jnp.where(lane < d_valid, s, 0.0)
    s_sum = jnp.sum(s, axis=-1, keepdims=True)
    # Narrow (tile_rows, 1) reciprocal + broadcast multiply instead of a
    # full-width (tile_rows, D) divide.
    inv = pl.reciprocal(s_sum + 1e-9, approx=False)
    # log(s / (s_sum + 1e-9) + 1e-9)
    o_ref[...] = jnp.log(s * inv + 1e-9).astype(o_ref.dtype)


def _vmem_limit_bytes() -> int:
    """Scoped-VMEM limit for the kernel, derived from the chip's capacity."""
    try:
        cap = int(pltpu.get_tpu_info().vmem_capacity_bytes)
    except Exception:
        cap = 64 * 1024 * 1024  # conservative (v7x-sized) fallback
    # ~48 MiB on v7x (64 MiB physical / TC), ~96 MiB on v5e/v6e (128 MiB).
    return min(int(cap * 0.75), 100 * 1024 * 1024)


def log_stablemax(logits: jax.Array,
                  dim: int = -1,
                  clamp_min: float = -10.0,
                  tile_rows=None) -> jax.Array:
    """Pallas implementation of LogStableMax.forward (reduction along `dim`)."""
    orig_shape = logits.shape
    orig_dtype = logits.dtype
    ndim = logits.ndim
    dim = dim % ndim

    # Move the reduction axis last (plain-JAX glue), flatten to 2D.
    # NOTE: for dim != -1 this costs one extra HBM pass (op is BW-bound).
    if dim != ndim - 1:
        perm = [a for a in range(ndim) if a != dim] + [dim]
        x = jnp.transpose(logits, perm)
    else:
        perm = None
        x = logits
    t_shape = x.shape
    D = t_shape[-1]
    rows = 1
    for s in t_shape[:-1]:
        rows *= s
    x2d = x.reshape(rows, D)

    # Lane-dense layout: pad D up to a multiple of 128 (unmasked vld/vst).
    d_pad = pl.cdiv(D, _LANE) * _LANE
    if d_pad != D:
        x2d = jnp.pad(x2d, ((0, 0), (0, d_pad - D)))

    # VMEM-budget-aware row tile: biggest tile that fits comfortably given
    # double-buffered in/out blocks plus ~3 f32 block-sized compute temps.
    vmem_limit = _vmem_limit_bytes()
    budget = int(vmem_limit * 0.85)
    itemsize = jnp.dtype(orig_dtype).itemsize
    per_row_bytes = d_pad * (2 * itemsize + 2 * itemsize + 3 * 4)
    if tile_rows is None:
        tile_rows = max(8, min(1024, (budget // per_row_bytes) // 8 * 8))
    if tile_rows >= rows:
        tile_rows = rows  # full row extent (allowed even if not a multiple of 8)

    grid = (pl.cdiv(rows, tile_rows),)
    kernel = functools.partial(_log_stablemax_kernel,
                               clamp_min=float(clamp_min), d_valid=D)

    out2d = pl.pallas_call(
        kernel,
        out_shape=jax.ShapeDtypeStruct((rows, d_pad), orig_dtype),
        grid_spec=pltpu.PrefetchScalarGridSpec(
            num_scalar_prefetch=0,
            grid=grid,
            # Full (padded) reduction axis per block; tile over rows only.
            in_specs=[pl.BlockSpec((tile_rows, d_pad), lambda i: (i, 0))],
            out_specs=pl.BlockSpec((tile_rows, d_pad), lambda i: (i, 0)),
        ),
        compiler_params=pltpu.CompilerParams(
            dimension_semantics=("parallel",),
            vmem_limit_bytes=vmem_limit,
        ),
    )(x2d)

    if d_pad != D:
        out2d = out2d[:, :D]
    out = out2d.reshape(t_shape)
    if perm is not None:
        inv_perm = [0] * ndim
        for pos, axis in enumerate(perm):
            inv_perm[axis] = pos
        out = jnp.transpose(out, inv_perm)
    return out.reshape(orig_shape)


def _reference_log_stablemax(logits, dim=-1, clamp_min=-10.0):
    x = jnp.maximum(logits.astype(jnp.float32), clamp_min)
    s = jnp.where(x >= 0, x + 1.0, 1.0 / (1.0 - x))
    s_sum = jnp.sum(s, axis=dim, keepdims=True)
    return jnp.log(s / (s_sum + 1e-9) + 1e-9).astype(logits.dtype)


if __name__ == "__main__":
    key = jax.random.PRNGKey(0)
    # Small logits tensor: batch=2, seq=8, hidden=32 (reduction over hidden).
    x = jax.random.normal(key, (2, 8, 32), dtype=jnp.float32) * 5.0

    out = jax.block_until_ready(log_stablemax(x, dim=-1, clamp_min=-10.0))
    ref = _reference_log_stablemax(x, dim=-1, clamp_min=-10.0)
    assert out.shape == x.shape and out.dtype == x.dtype
    assert jnp.allclose(out, ref, atol=1e-5, rtol=1e-5), "mismatch vs reference"

    # Also exercise the lane-dense (D % 128 == 0) path with bf16 passthrough.
    x2 = jax.random.normal(jax.random.PRNGKey(0), (4, 64, 256),
                           dtype=jnp.bfloat16) * 3.0
    out2 = jax.block_until_ready(log_stablemax(x2))
    ref2 = _reference_log_stablemax(x2)
    assert out2.shape == x2.shape and out2.dtype == x2.dtype
    assert jnp.allclose(out2.astype(jnp.float32), ref2.astype(jnp.float32),
                        atol=2e-2, rtol=2e-2), "bf16 mismatch vs reference"

    print("KERNEL_OK")
</pallas_src>

<mosaic_0001>
module attributes {stable_mosaic.version = 11 : i64} {
  func.func @_log_stablemax_kernel(%arg0: i32, %arg1: memref<16x128xf32, #tpu.memory_space<vmem>>, %arg2: memref<16x128xf32, #tpu.memory_space<vmem>>) attributes {dimension_semantics = [#tpu.dimension_semantics<parallel>], iteration_bounds = array<i64: 1>, scalar_prefetch = 0 : i64, scratch_operands = 0 : i64, tpu.core_type = #tpu.core_type<tc>, window_params = [{transform_indices = @transform_0, window_bounds = array<i64: 16, 128>}, {transform_indices = @transform_1, window_bounds = array<i64: 16, 128>}]} {
    %c0 = arith.constant 0 : index
    %c0_0 = arith.constant 0 : index
    %0 = vector.load %arg1[%c0, %c0_0] : memref<16x128xf32, #tpu.memory_space<vmem>>, vector<16x128xf32>
    %cst = arith.constant -1.000000e+01 : f32
    %1 = vector.broadcast %cst : f32 to vector<16x128xf32>
    %2 = arith.maximumf %0, %1 : vector<16x128xf32>
    %cst_1 = arith.constant 0.000000e+00 : f32
    %3 = vector.broadcast %cst_1 : f32 to vector<16x128xf32>
    %4 = arith.cmpf oge, %2, %3 : vector<16x128xf32>
    %cst_2 = arith.constant 1.000000e+00 : f32
    %5 = vector.broadcast %cst_2 : f32 to vector<16x128xf32>
    %6 = arith.addf %2, %5 : vector<16x128xf32>
    %cst_3 = arith.constant 1.000000e+00 : f32
    %7 = vector.broadcast %cst_3 : f32 to vector<16x128xf32>
    %8 = arith.subf %7, %2 : vector<16x128xf32>
    %9 = tpu.reciprocal %8 : vector<16x128xf32> -> vector<16x128xf32>
    %10 = arith.select %4, %6, %9 : vector<16x128xi1>, vector<16x128xf32>
    %11 = tpu.iota {dimensions = array<i32: 1>} : vector<16x128xi32>
    %c32_i32 = arith.constant 32 : i32
    %12 = vector.broadcast %c32_i32 : i32 to vector<16x128xi32>
    %13 = arith.cmpi slt, %11, %12 : vector<16x128xi32>
    %cst_4 = arith.constant 0.000000e+00 : f32
    %14 = vector.broadcast %cst_4 : f32 to vector<16x128xf32>
    %15 = arith.select %13, %10, %14 : vector<16x128xi1>, vector<16x128xf32>
    %cst_5 = arith.constant dense<0.000000e+00> : vector<16xf32>
    %16 = vector.multi_reduction <add>, %15, %cst_5 [1] : vector<16x128xf32> to vector<16xf32>
    %17 = vector.shape_cast %16 : vector<16xf32> to vector<16x1xf32>
    %cst_6 = arith.constant 9.99999971E-10 : f32
    %18 = vector.broadcast %cst_6 : f32 to vector<16x1xf32>
    %19 = arith.addf %17, %18 : vector<16x1xf32>
    %20 = tpu.reciprocal %19 : vector<16x1xf32> -> vector<16x1xf32>
    %21 = vector.broadcast %20 : vector<16x1xf32> to vector<16x128xf32>
    %22 = arith.mulf %15, %21 : vector<16x128xf32>
    %cst_7 = arith.constant 9.99999971E-10 : f32
    %23 = vector.broadcast %cst_7 : f32 to vector<16x128xf32>
    %24 = arith.addf %22, %23 : vector<16x128xf32>
    %25 = math.log %24 : vector<16x128xf32>
    %c0_8 = arith.constant 0 : index
    %c0_9 = arith.constant 0 : index
    %26 = vector.load %arg2[%c0_8, %c0_9] : memref<16x128xf32, #tpu.memory_space<vmem>>, vector<16x128xf32>
    tpu.vector_store %arg2[%c0_8, %c0_9], %25 {strides = array<i32>} : memref<16x128xf32, #tpu.memory_space<vmem>>, vector<16x128xf32>,
    return
  }
  func.func @transform_0(%arg0: i32) -> (i32, i32) {
    %c0_i32 = arith.constant 0 : i32
    %c0_i32_0 = arith.constant 0 : i32
    return %arg0, %c0_i32 : i32, i32
  }
  func.func @transform_1(%arg0: i32) -> (i32, i32) {
    %c0_i32 = arith.constant 0 : i32
    %c0_i32_0 = arith.constant 0 : i32
    return %arg0, %c0_i32 : i32, i32
  }
}

</mosaic_0001>

<bundles_post_ra>
// kernel: tpu_custom_call.1
= control target key start
LH: loop header
LB: loop body
LE: loop exit
PB: predicated region body
PF: predicated region fallthrough
CT: control target
= control target key end

     0   :  { %6 = vsyncpa [#allocation3], 0  ;;  %s227_s0 = inlined_call_operand.hbm [shape: f32[16,128], index: 0, kind: input, shape index: {}]   ;;  %s228_s1 = inlined_call_operand.hbm [shape: f32[16,128], index: 1, kind: output, shape index: {}]  }
   0x1   :  { %7 = vsyncpa [#allocation4], 0  ;;  %s12_s8 = sshll.u32 %s227_s0, 4  ;;  %s201_s9 = smov [#allocation2]   ;;  %s13_s8 = int_to_ptr.hbm [resolvable:$true] %s12_s8 }
   0x2   :  { %s14_s10 = sshll.u32 %s201_s9, 4  ;;  %s202_s11 = smov 128   ;;  %s15_s10 = int_to_ptr.vmem [resolvable:$true] %s14_s10 }
   0x3   :  { %s203_s12 = smov 8  }
   0x4   :  { %20 = dma.hbm_to_vmem [thread:$0]  %s13_s8, 256, %s15_s10, [#allocation3], %s202_s11, %s202_s11, %s203_s12  }
   0x5   :  { %197 = dma.done.wait [#allocation3], 256  }
   0x6   :  { %198 = vsyncadd [#allocation3], 4294967040  ;;  %v25_v0 = vld [vmem:[#allocation2] sm:$0xff]  ;;  %v26_v1 = vld [vmem:[#allocation2 + $0x8] sm:$0xff]  ;;  %v65_v9 = vlaneseq  ;;  %s204_s0 = smov [#allocation5]   ;;  %s120_s16 = sshll.u32 %s228_s1, 4  ;;  %s121_s16 = int_to_ptr.hbm [resolvable:$true] %s120_s16 }
   0x7   :  { %v27_v2 = vmax.f32 %v25_v0, -10.0  ;;  %v28_v3 = vmax.f32 %v26_v1, -10.0  ;;  %s118_s13 = sshll.u32 %s204_s0, 4  ;;  %s119_s13 = int_to_ptr.vmem [resolvable:$true] %s118_s13 }
   0x8   :  { %v66_v17 = vand.u32 127, %v65_v9 }
   0x9   :  { %v33_v4 = vsub.f32 1.0, %v27_v2  ;;  %v34_v5 = vsub.f32 1.0, %v28_v3  ;;  %v31_v21 = vadd.f32 1.0, %v27_v2  ;;  %vm29_vm7 = vcmp.ge.f32.partialorder %v27_v2, 0.0 }
   0xa   :  { %vm67_vm8 = vcmp.lt.s32.totalorder %v66_v17, 32  ;;  %v32_v29 = vadd.f32 1.0, %v28_v3  ;;  %vm30_vm10 = vcmp.ge.f32.partialorder %v28_v3, 0.0 }
   0xb   :  { %137 = vrcp.f32 %v33_v4  ;;  %v46_v10 = vand.u32 2147483648, %v33_v4  ;;  %vm40_vm0 = vweird.f32 %v33_v4  ;;  %v44_v13 = vand.u32 2147483647, %v33_v4 }
   0xc   :  { %139 = vrcp.f32 %v34_v5  ;;  %vm54_vm2 = vweird.f32 %v34_v5  ;;  %v60_v15 = vand.u32 2147483648, %v34_v5  ;;  %v58_v18 = vand.u32 2147483647, %v34_v5 }
   0xd   :  { %v47_v19 = vor.u32 1.1754944e-38, %v46_v10  ;;  %vm45_vm5 = vcmp.eq.f32.partialorder %v44_v13, 8.507059e+37 }
   0xe   :  { %v61_v24 = vor.u32 1.1754944e-38, %v60_v15  ;;  %vm59_vm9 = vcmp.eq.f32.partialorder %v58_v18, 8.507059e+37 }
  0x11   :  { %v138_v6 = vpop.eup %137 }
  0x12   :  { %v140_v7 = vpop.eup %139  ;;  %v36_v8 = vmul.f32 %v138_v6, %v33_v4  ;;  %vm41_vm1 = vweird.f32 %v138_v6 }
  0x13   :  { %v50_v11 = vmul.f32 %v140_v7, %v34_v5  ;;  %vm55_vm3 = vweird.f32 %v140_v7  ;;  %vm42_vm4 = vmor %vm40_vm0, %vm41_vm1 }
  0x14   :  { %v37_v12 = vsub.f32 1.0, %v36_v8  ;;  %vm56_vm6 = vmor %vm54_vm2, %vm55_vm3 }
  0x15   :  { %v51_v14 = vsub.f32 1.0, %v50_v11 }
  0x16   :  { %v38_v16 = vmul.f32 %v138_v6, %v37_v12 }
  0x17   :  { %v52_v20 = vmul.f32 %v140_v7, %v51_v14 }
  0x18   :  { %v39_v22 = vadd.f32 %v138_v6, %v38_v16 }
  0x19   :  { %v53_v23 = vadd.f32 %v140_v7, %v52_v20 }
  0x1a   :  { %v43_v25 = vsel %vm42_vm4, %v138_v6, %v39_v22 }
  0x1b   :  { %v48_v26 = vsel %vm45_vm5, %v47_v19, %v43_v25  ;;  %v57_v27 = vsel %vm56_vm6, %v140_v7, %v53_v23 }
  0x1c   :  { %v63_v28 = vsel %vm29_vm7, %v31_v21, %v48_v26  ;;  %v62_v31 = vsel %vm59_vm9, %v61_v24, %v57_v27 }
  0x1d   :  { %v68_v30 = vsel %vm67_vm8, %v63_v28, 0.0  ;;  %v64_v32 = vsel %vm30_vm10, %v32_v29, %v62_v31 }
  0x1e   :  { %70 = vadd.xlane.f32.xlu0 %v68_v30  ;;  %v69_v33 = vsel %vm67_vm8, %v64_v32, 0.0 }
  0x26   :  { %72 = vadd.xlane.f32.xlu0 %v69_v33 }
  0x91   :  { %v71_v34 = vpop.xlane.xlu0 %70 }
  0x92   :  { %v74_v35 = vadd.f32 1e-09, %v71_v34 }
  0x94   :  { %141 = vrcp.f32 %v74_v35  ;;  %v87_v41 = vand.u32 2147483648, %v74_v35  ;;  %v85_v43 = vand.u32 2147483647, %v74_v35  ;;  %vm81_vm12 = vweird.f32 %v74_v35 }
  0x96   :  { %v88_v46 = vor.u32 1.1754944e-38, %v87_v41  ;;  %vm86_vm14 = vcmp.eq.f32.partialorder %v85_v43, 8.507059e+37 }
  0x99   :  { %v73_v36 = vpop.xlane.xlu0 %72 }
  0x9a   :  { %v142_v37 = vpop.eup %141  ;;  %v75_v38 = vadd.f32 1e-09, %v73_v36 }
  0x9b   :  { %v77_v39 = vmul.f32 %v142_v37, %v74_v35  ;;  %vm82_vm11 = vweird.f32 %v142_v37 }
  0x9c   :  { %143 = vrcp.f32 %v75_v38  ;;  %vm83_vm13 = vmor %vm81_vm12, %vm82_vm11  ;;  %v101_v52 = vand.u32 2147483648, %v75_v38  ;;  %v99_v54 = vand.u32 2147483647, %v75_v38  ;;  %vm95_vm0 = vweird.f32 %v75_v38 }
  0x9d   :  { %v78_v40 = vsub.f32 1.0, %v77_v39 }
  0x9e   :  { %v102_v57 = vor.u32 1.1754944e-38, %v101_v52  ;;  %vm100_vm2 = vcmp.eq.f32.partialorder %v99_v54, 8.507059e+37 }
  0x9f   :  { %v79_v42 = vmul.f32 %v142_v37, %v78_v40 }
  0xa1   :  { %v80_v44 = vadd.f32 %v142_v37, %v79_v42 }
  0xa2   :  { %v144_v45 = vpop.eup %143 }
  0xa3   :  { %v91_v47 = vmul.f32 %v144_v45, %v75_v38  ;;  %v84_v48 = vsel %vm83_vm13, %v142_v37, %v80_v44  ;;  %vm96_vm15 = vweird.f32 %v144_v45 }
  0xa4   :  { %v89_v49 = vsel %vm86_vm14, %v88_v46, %v84_v48  ;;  %vm97_vm1 = vmor %vm95_vm0, %vm96_vm15 }
  0xa5   :  { %v92_v50 = vsub.f32 1.0, %v91_v47  ;;  %v104_v51 = vmul.f32 %v89_v49, %v68_v30 }
  0xa7   :  { %v93_v53 = vmul.f32 %v144_v45, %v92_v50  ;;  %v106_v55 = vadd.f32 1e-09, %v104_v51 }
  0xa9   :  { %v94_v56 = vadd.f32 %v144_v45, %v93_v53  ;;  %145 = vlog2.f32 %v106_v55 }
  0xab   :  { %v98_v58 = vsel %vm97_vm1, %v144_v45, %v94_v56 }
  0xac   :  { %v103_v59 = vsel %vm100_vm2, %v102_v57, %v98_v58 }
  0xad   :  { %v105_v60 = vmul.f32 %v103_v59, %v69_v33 }
  0xaf   :  { %v146_v61 = vpop.eup %145  ;;  %v107_v62 = vadd.f32 1e-09, %v105_v60 }
  0xb0   :  { %v109_v63 = vmul.f32 0.6931472, %v146_v61 }
  0xb1   :  { %147 = vlog2.f32 %v107_v62 }
  0xb2   :  { %112 = vst [vmem:[#allocation5] sm:$0xff] %v109_v63 }
  0xb7   :  { %v148_v0 = vpop.eup %147 }
  0xb8   :  { %v111_v1 = vmul.f32 0.6931472, %v148_v0 }
  0xba   :  { %113 = vst [vmem:[#allocation5 + $0x8] sm:$0xff] %v111_v1 }
  0xbb   :  { %126 = dma.vmem_to_hbm [thread:$0]  %s119_s13, 256, %s121_s16, [#allocation4], %s202_s11, %s202_s11, %s203_s12  }
  0xbc   :  { %199 = dma.done.wait [#allocation4], 256  }
  0xbd   :  { %200 = vsyncadd [#allocation4], 4294967040 }
  0xbe   :  { %131 = vsyncpa [#allocation3], 1 }
  0xbf   :  { %132 = vsyncpa [#allocation4], 1 }

</bundles_post_ra>
